<compile_context>
chip_gen: v7x
topology: tpu7x:2x2x1
jax: 0.10.0
libtpu: 0.0.40
codegen_flags: <defaults>
</compile_context>

<pallas_src>
import functools

import jax
import jax.numpy as jnp
from jax.experimental import pallas as pl
from jax.experimental.pallas import tpu as pltpu


def bert_embeddings_kernel(input_ids_smem,                       # (Npad,) int32, SMEM (scalar prefetch)
                           pos_ids_ref, tok_ids_ref, task_ids_ref,  # (tile_n, 1) int32 VMEM tiles
                           word_hbm,                              # (V, H) word table, raw HBM ref
                           pos_ref, tok_ref, task_ref,            # small tables, VMEM-resident
                           gamma_ref, beta_ref,                   # (1, H) LayerNorm affine
                           out_ref,                               # (tile_n, H) output tile
                           word_rows, sems,                       # scratch: gather buffer + DMA sem
                           *, eps, tile_n):
    base = pl.program_id(0) * tile_n
    sem = sems.at[0]

    # 1) Word embeddings: DMA row-gather from HBM using scalar-prefetched ids.
    #    All copies are the same size and signal the same semaphore.
    copies = []
    for t in range(tile_n):
        row = input_ids_smem[base + t]
        cp = pltpu.make_async_copy(word_hbm.at[pl.ds(row, 1)],
                                   word_rows.at[pl.ds(t, 1)],
                                   sem)
        cp.start()
        copies.append(cp)

    # 2) Position embeddings: one-hot matmul against the small VMEM-resident table.
    #    (General fallback for arbitrary position_ids; when positions are the default
    #    arange this could be replaced by a contiguous slice.)
    P = pos_ref.shape[0]
    pos_ids = pos_ids_ref[...]                                    # (tile_n, 1) int32
    iota = jax.lax.broadcasted_iota(jnp.int32, (tile_n, P), 1)
    onehot = (pos_ids == iota).astype(jnp.float32)
    emb = jnp.dot(onehot, pos_ref[...].astype(jnp.float32),
                  preferred_element_type=jnp.float32)             # (tile_n, H)

    # 3) token_type / task_type: tiny vocabularies -> VPU selects (no MXU, no one-hot).
    tok_ids = tok_ids_ref[...]                                    # (tile_n, 1)
    for v in range(tok_ref.shape[0]):
        row = tok_ref[pl.ds(v, 1), :].astype(jnp.float32)         # (1, H)
        emb = emb + jnp.where(tok_ids == v, 1.0, 0.0) * row
    task_ids = task_ids_ref[...]
    for v in range(task_ref.shape[0]):
        row = task_ref[pl.ds(v, 1), :].astype(jnp.float32)        # (1, H)
        emb = emb + jnp.where(task_ids == v, 1.0, 0.0) * row

    # 4) Wait for the word-row DMAs and accumulate.
    for cp in copies:
        cp.wait()
    emb = emb + word_rows[...].astype(jnp.float32)

    # 5) LayerNorm over H (f32 statistics) + affine; lane-dense 2D store.
    mean = jnp.mean(emb, axis=-1, keepdims=True)
    var = jnp.mean((emb - mean) * (emb - mean), axis=-1, keepdims=True)
    norm = (emb - mean) * jax.lax.rsqrt(var + eps)
    out = norm * gamma_ref[...].astype(jnp.float32) + beta_ref[...].astype(jnp.float32)
    out_ref[...] = out.astype(out_ref.dtype)
    # Dropout is identity in eval mode.
    # TODO(synk): training-mode dropout (hidden_dropout_prob) not implemented.


def bert_embeddings(input_ids, token_type_ids, position_ids, task_type_ids,
                    word_emb, pos_emb, tok_emb, task_emb, gamma, beta,
                    eps=1e-12, tile_n=256):
    B, S = input_ids.shape
    H = word_emb.shape[1]
    N = B * S

    # Token-tile size: multiple of 8 sublanes, no larger than the padded token count.
    tile_n = max(8, min(tile_n, ((N + 7) // 8) * 8))
    tile_n = (tile_n // 8) * 8
    n_pad = pl.cdiv(N, tile_n) * tile_n
    grid = (n_pad // tile_n,)

    def flat_pad(x):
        x = x.reshape(N).astype(jnp.int32)
        if n_pad > N:
            x = jnp.pad(x, (0, n_pad - N))   # pad with id 0 (valid row, rows discarded)
        return x

    ids_flat = flat_pad(input_ids)                           # scalar-prefetched into SMEM
    pos_flat = flat_pad(position_ids).reshape(n_pad, 1)
    tok_flat = flat_pad(token_type_ids).reshape(n_pad, 1)
    task_flat = flat_pad(task_type_ids).reshape(n_pad, 1)

    kernel = functools.partial(bert_embeddings_kernel, eps=eps, tile_n=tile_n)

    id_spec = pl.BlockSpec((tile_n, 1), lambda i, ids: (i, 0))

    def resident(arr):   # small table: single whole-array VMEM block, constant index map
        return pl.BlockSpec(arr.shape, lambda i, ids: (0, 0))

    out = pl.pallas_call(
        kernel,
        out_shape=jax.ShapeDtypeStruct((n_pad, H), jnp.float32),
        grid_spec=pltpu.PrefetchScalarGridSpec(
            num_scalar_prefetch=1,
            grid=grid,
            in_specs=[
                id_spec, id_spec, id_spec,                   # position / token / task ids
                pl.BlockSpec(memory_space=pl.ANY),           # word table stays in HBM
                resident(pos_emb), resident(tok_emb), resident(task_emb),
                resident(gamma), resident(beta),
            ],
            out_specs=pl.BlockSpec((tile_n, H), lambda i, ids: (i, 0)),
            scratch_shapes=[
                pltpu.VMEM((tile_n, H), word_emb.dtype),     # gathered word rows
                pltpu.SemaphoreType.DMA((1,)),
            ],
        ),
        compiler_params=pltpu.CompilerParams(
            dimension_semantics=("parallel",),
            vmem_limit_bytes=32 * 1024 * 1024,
        ),
    )(ids_flat, pos_flat, tok_flat, task_flat,
      word_emb, pos_emb, tok_emb, task_emb, gamma, beta)

    return out[:N].reshape(B, S, H)


def reference(input_ids, token_type_ids, position_ids, task_type_ids,
              word_emb, pos_emb, tok_emb, task_emb, gamma, beta, eps=1e-12):
    emb = (word_emb[input_ids] + pos_emb[position_ids]
           + tok_emb[token_type_ids] + task_emb[task_type_ids])
    mean = emb.mean(-1, keepdims=True)
    var = ((emb - mean) ** 2).mean(-1, keepdims=True)
    return (emb - mean) / jnp.sqrt(var + eps) * gamma[0] + beta[0]


if __name__ == "__main__":
    # Small synthetic config (mirrors the BertConfig fields used by the module)
    vocab_size = 32
    hidden_size = 32
    max_position_embeddings = 16
    type_vocab_size = 2
    task_type_vocab_size = 4
    pad_token_id = 0
    layer_norm_eps = 1e-12
    B, S = 2, 8

    key = jax.random.PRNGKey(0)
    k_word, k_pos, k_tok, k_task, k_g, k_b, k_ids, k_tt = jax.random.split(key, 8)

    word_emb = 0.02 * jax.random.normal(k_word, (vocab_size, hidden_size), jnp.float32)
    word_emb = word_emb.at[pad_token_id].set(0.0)  # padding_idx row is zero-initialized
    pos_emb = 0.02 * jax.random.normal(k_pos, (max_position_embeddings, hidden_size), jnp.float32)
    tok_emb = 0.02 * jax.random.normal(k_tok, (type_vocab_size, hidden_size), jnp.float32)
    task_emb = 0.02 * jax.random.normal(k_task, (task_type_vocab_size, hidden_size), jnp.float32)
    gamma = (1.0 + 0.1 * jax.random.normal(k_g, (1, hidden_size), jnp.float32))
    beta = 0.1 * jax.random.normal(k_b, (1, hidden_size), jnp.float32)

    input_ids = jax.random.randint(k_ids, (B, S), 0, vocab_size, jnp.int32)
    token_type_ids = jnp.zeros((B, S), jnp.int32)        # default buffered token_type_ids
    position_ids = jnp.broadcast_to(jnp.arange(S, dtype=jnp.int32), (B, S))  # absolute positions
    task_type_ids = jnp.zeros((B, S), jnp.int32)         # default buffered task_type_ids

    out = bert_embeddings(input_ids, token_type_ids, position_ids, task_type_ids,
                          word_emb, pos_emb, tok_emb, task_emb, gamma, beta,
                          eps=layer_norm_eps, tile_n=8)   # tile_n=8 -> grid of 2 tiles
    out = jax.block_until_ready(out)

    ref = reference(input_ids, token_type_ids, position_ids, task_type_ids,
                    word_emb, pos_emb, tok_emb, task_emb, gamma, beta,
                    eps=layer_norm_eps)
    assert out.shape == (B, S, hidden_size)
    assert jnp.allclose(out, ref, atol=1e-5, rtol=1e-5)
    print("KERNEL_OK")
</pallas_src>

<mosaic_0001>
module attributes {stable_mosaic.version = 11 : i64} {
  func.func @bert_embeddings_kernel(%arg0: i32, %arg1: memref<16xi32, #tpu.memory_space<smem>>, %arg2: memref<8x1xi32, #tpu.memory_space<vmem>>, %arg3: memref<8x1xi32, #tpu.memory_space<vmem>>, %arg4: memref<8x1xi32, #tpu.memory_space<vmem>>, %arg5: memref<32x32xf32, #tpu.memory_space<any>>, %arg6: memref<16x32xf32, #tpu.memory_space<vmem>>, %arg7: memref<2x32xf32, #tpu.memory_space<vmem>>, %arg8: memref<4x32xf32, #tpu.memory_space<vmem>>, %arg9: memref<1x32xf32, #tpu.memory_space<vmem>>, %arg10: memref<1x32xf32, #tpu.memory_space<vmem>>, %arg11: memref<8x32xf32, #tpu.memory_space<vmem>>, %arg12: memref<8x32xf32, #tpu.memory_space<vmem>>, %arg13: memref<1x!tpu.dma_semaphore, #tpu.memory_space<semaphore_mem>>) attributes {dimension_semantics = [#tpu.dimension_semantics<parallel>], iteration_bounds = array<i64: 2>, scalar_prefetch = 1 : i64, scratch_operands = 2 : i64, tpu.core_type = #tpu.core_type<tc>, window_params = [{transform_indices = @transform_0, window_bounds = array<i64: 8, 1>}, {transform_indices = @transform_1, window_bounds = array<i64: 8, 1>}, {transform_indices = @transform_2, window_bounds = array<i64: 8, 1>}, {}, {pipeline_mode = #tpu.pipeline_mode<synchronous>, transform_indices = @transform_4, window_bounds = array<i64: 16, 32>}, {pipeline_mode = #tpu.pipeline_mode<synchronous>, transform_indices = @transform_5, window_bounds = array<i64: 2, 32>}, {pipeline_mode = #tpu.pipeline_mode<synchronous>, transform_indices = @transform_6, window_bounds = array<i64: 4, 32>}, {pipeline_mode = #tpu.pipeline_mode<synchronous>, transform_indices = @transform_7, window_bounds = array<i64: 1, 32>}, {pipeline_mode = #tpu.pipeline_mode<synchronous>, transform_indices = @transform_8, window_bounds = array<i64: 1, 32>}, {transform_indices = @transform_9, window_bounds = array<i64: 8, 32>}]} {
    %c8_i32 = arith.constant 8 : i32
    %0 = arith.muli %arg0, %c8_i32 : i32
    %c0_i32 = arith.constant 0 : i32
    %1 = arith.addi %0, %c0_i32 : i32
    %2 = arith.index_cast %1 : i32 to index
    %3 = memref.load %arg1[%2] : memref<16xi32, #tpu.memory_space<smem>>
    %c0_i32_0 = arith.constant 0 : i32
    %c0_i32_1 = arith.constant 0 : i32
    %4 = tpu.memref_slice %arg5[%3, %c0_i32_1] : memref<32x32xf32, #tpu.memory_space<any>> -> memref<1x32xf32, #tpu.memory_space<any>>
    %c0_i32_2 = arith.constant 0 : i32
    %c0_i32_3 = arith.constant 0 : i32
    %5 = tpu.memref_slice %arg12[%c0_i32_2, %c0_i32_3] : memref<8x32xf32, #tpu.memory_space<vmem>> -> memref<1x32xf32, #tpu.memory_space<vmem>>
    %6 = tpu.memref_slice %arg13[%c0_i32_0] : memref<1x!tpu.dma_semaphore, #tpu.memory_space<semaphore_mem>> -> memref<1x!tpu.dma_semaphore, #tpu.memory_space<semaphore_mem>>
    %7 = tpu.memref_squeeze %6 : memref<1x!tpu.dma_semaphore, #tpu.memory_space<semaphore_mem>> -> memref<!tpu.dma_semaphore, #tpu.memory_space<semaphore_mem>>
    tpu.enqueue_dma source(%4 : memref<1x32xf32, #tpu.memory_space<any>>) target(%5 : memref<1x32xf32, #tpu.memory_space<vmem>>) target_semaphore(%7 : memref<!tpu.dma_semaphore, #tpu.memory_space<semaphore_mem>>)
    %c1_i32 = arith.constant 1 : i32
    %8 = arith.addi %0, %c1_i32 : i32
    %9 = arith.index_cast %8 : i32 to index
    %10 = memref.load %arg1[%9] : memref<16xi32, #tpu.memory_space<smem>>
    %c0_i32_4 = arith.constant 0 : i32
    %c0_i32_5 = arith.constant 0 : i32
    %11 = tpu.memref_slice %arg5[%10, %c0_i32_5] : memref<32x32xf32, #tpu.memory_space<any>> -> memref<1x32xf32, #tpu.memory_space<any>>
    %c1_i32_6 = arith.constant 1 : i32
    %c0_i32_7 = arith.constant 0 : i32
    %12 = tpu.memref_slice %arg12[%c1_i32_6, %c0_i32_7] : memref<8x32xf32, #tpu.memory_space<vmem>> -> memref<1x32xf32, #tpu.memory_space<vmem>>
    %13 = tpu.memref_slice %arg13[%c0_i32_4] : memref<1x!tpu.dma_semaphore, #tpu.memory_space<semaphore_mem>> -> memref<1x!tpu.dma_semaphore, #tpu.memory_space<semaphore_mem>>
    %14 = tpu.memref_squeeze %13 : memref<1x!tpu.dma_semaphore, #tpu.memory_space<semaphore_mem>> -> memref<!tpu.dma_semaphore, #tpu.memory_space<semaphore_mem>>
    tpu.enqueue_dma source(%11 : memref<1x32xf32, #tpu.memory_space<any>>) target(%12 : memref<1x32xf32, #tpu.memory_space<vmem>>) target_semaphore(%14 : memref<!tpu.dma_semaphore, #tpu.memory_space<semaphore_mem>>)
    %c2_i32 = arith.constant 2 : i32
    %15 = arith.addi %0, %c2_i32 : i32
    %16 = arith.index_cast %15 : i32 to index
    %17 = memref.load %arg1[%16] : memref<16xi32, #tpu.memory_space<smem>>
    %c0_i32_8 = arith.constant 0 : i32
    %c0_i32_9 = arith.constant 0 : i32
    %18 = tpu.memref_slice %arg5[%17, %c0_i32_9] : memref<32x32xf32, #tpu.memory_space<any>> -> memref<1x32xf32, #tpu.memory_space<any>>
    %c2_i32_10 = arith.constant 2 : i32
    %c0_i32_11 = arith.constant 0 : i32
    %19 = tpu.memref_slice %arg12[%c2_i32_10, %c0_i32_11] : memref<8x32xf32, #tpu.memory_space<vmem>> -> memref<1x32xf32, #tpu.memory_space<vmem>>
    %20 = tpu.memref_slice %arg13[%c0_i32_8] : memref<1x!tpu.dma_semaphore, #tpu.memory_space<semaphore_mem>> -> memref<1x!tpu.dma_semaphore, #tpu.memory_space<semaphore_mem>>
    %21 = tpu.memref_squeeze %20 : memref<1x!tpu.dma_semaphore, #tpu.memory_space<semaphore_mem>> -> memref<!tpu.dma_semaphore, #tpu.memory_space<semaphore_mem>>
    tpu.enqueue_dma source(%18 : memref<1x32xf32, #tpu.memory_space<any>>) target(%19 : memref<1x32xf32, #tpu.memory_space<vmem>>) target_semaphore(%21 : memref<!tpu.dma_semaphore, #tpu.memory_space<semaphore_mem>>)
    %c3_i32 = arith.constant 3 : i32
    %22 = arith.addi %0, %c3_i32 : i32
    %23 = arith.index_cast %22 : i32 to index
    %24 = memref.load %arg1[%23] : memref<16xi32, #tpu.memory_space<smem>>
    %c0_i32_12 = arith.constant 0 : i32
    %c0_i32_13 = arith.constant 0 : i32
    %25 = tpu.memref_slice %arg5[%24, %c0_i32_13] : memref<32x32xf32, #tpu.memory_space<any>> -> memref<1x32xf32, #tpu.memory_space<any>>
    %c3_i32_14 = arith.constant 3 : i32
    %c0_i32_15 = arith.constant 0 : i32
    %26 = tpu.memref_slice %arg12[%c3_i32_14, %c0_i32_15] : memref<8x32xf32, #tpu.memory_space<vmem>> -> memref<1x32xf32, #tpu.memory_space<vmem>>
    %27 = tpu.memref_slice %arg13[%c0_i32_12] : memref<1x!tpu.dma_semaphore, #tpu.memory_space<semaphore_mem>> -> memref<1x!tpu.dma_semaphore, #tpu.memory_space<semaphore_mem>>
    %28 = tpu.memref_squeeze %27 : memref<1x!tpu.dma_semaphore, #tpu.memory_space<semaphore_mem>> -> memref<!tpu.dma_semaphore, #tpu.memory_space<semaphore_mem>>
    tpu.enqueue_dma source(%25 : memref<1x32xf32, #tpu.memory_space<any>>) target(%26 : memref<1x32xf32, #tpu.memory_space<vmem>>) target_semaphore(%28 : memref<!tpu.dma_semaphore, #tpu.memory_space<semaphore_mem>>)
    %c4_i32 = arith.constant 4 : i32
    %29 = arith.addi %0, %c4_i32 : i32
    %30 = arith.index_cast %29 : i32 to index
    %31 = memref.load %arg1[%30] : memref<16xi32, #tpu.memory_space<smem>>
    %c0_i32_16 = arith.constant 0 : i32
    %c0_i32_17 = arith.constant 0 : i32
    %32 = tpu.memref_slice %arg5[%31, %c0_i32_17] : memref<32x32xf32, #tpu.memory_space<any>> -> memref<1x32xf32, #tpu.memory_space<any>>
    %c4_i32_18 = arith.constant 4 : i32
    %c0_i32_19 = arith.constant 0 : i32
    %33 = tpu.memref_slice %arg12[%c4_i32_18, %c0_i32_19] : memref<8x32xf32, #tpu.memory_space<vmem>> -> memref<1x32xf32, #tpu.memory_space<vmem>>
    %34 = tpu.memref_slice %arg13[%c0_i32_16] : memref<1x!tpu.dma_semaphore, #tpu.memory_space<semaphore_mem>> -> memref<1x!tpu.dma_semaphore, #tpu.memory_space<semaphore_mem>>
    %35 = tpu.memref_squeeze %34 : memref<1x!tpu.dma_semaphore, #tpu.memory_space<semaphore_mem>> -> memref<!tpu.dma_semaphore, #tpu.memory_space<semaphore_mem>>
    tpu.enqueue_dma source(%32 : memref<1x32xf32, #tpu.memory_space<any>>) target(%33 : memref<1x32xf32, #tpu.memory_space<vmem>>) target_semaphore(%35 : memref<!tpu.dma_semaphore, #tpu.memory_space<semaphore_mem>>)
    %c5_i32 = arith.constant 5 : i32
    %36 = arith.addi %0, %c5_i32 : i32
    %37 = arith.index_cast %36 : i32 to index
    %38 = memref.load %arg1[%37] : memref<16xi32, #tpu.memory_space<smem>>
    %c0_i32_20 = arith.constant 0 : i32
    %c0_i32_21 = arith.constant 0 : i32
    %39 = tpu.memref_slice %arg5[%38, %c0_i32_21] : memref<32x32xf32, #tpu.memory_space<any>> -> memref<1x32xf32, #tpu.memory_space<any>>
    %c5_i32_22 = arith.constant 5 : i32
    %c0_i32_23 = arith.constant 0 : i32
    %40 = tpu.memref_slice %arg12[%c5_i32_22, %c0_i32_23] : memref<8x32xf32, #tpu.memory_space<vmem>> -> memref<1x32xf32, #tpu.memory_space<vmem>>
    %41 = tpu.memref_slice %arg13[%c0_i32_20] : memref<1x!tpu.dma_semaphore, #tpu.memory_space<semaphore_mem>> -> memref<1x!tpu.dma_semaphore, #tpu.memory_space<semaphore_mem>>
    %42 = tpu.memref_squeeze %41 : memref<1x!tpu.dma_semaphore, #tpu.memory_space<semaphore_mem>> -> memref<!tpu.dma_semaphore, #tpu.memory_space<semaphore_mem>>
    tpu.enqueue_dma source(%39 : memref<1x32xf32, #tpu.memory_space<any>>) target(%40 : memref<1x32xf32, #tpu.memory_space<vmem>>) target_semaphore(%42 : memref<!tpu.dma_semaphore, #tpu.memory_space<semaphore_mem>>)
    %c6_i32 = arith.constant 6 : i32
    %43 = arith.addi %0, %c6_i32 : i32
    %44 = arith.index_cast %43 : i32 to index
    %45 = memref.load %arg1[%44] : memref<16xi32, #tpu.memory_space<smem>>
    %c0_i32_24 = arith.constant 0 : i32
    %c0_i32_25 = arith.constant 0 : i32
    %46 = tpu.memref_slice %arg5[%45, %c0_i32_25] : memref<32x32xf32, #tpu.memory_space<any>> -> memref<1x32xf32, #tpu.memory_space<any>>
    %c6_i32_26 = arith.constant 6 : i32
    %c0_i32_27 = arith.constant 0 : i32
    %47 = tpu.memref_slice %arg12[%c6_i32_26, %c0_i32_27] : memref<8x32xf32, #tpu.memory_space<vmem>> -> memref<1x32xf32, #tpu.memory_space<vmem>>
    %48 = tpu.memref_slice %arg13[%c0_i32_24] : memref<1x!tpu.dma_semaphore, #tpu.memory_space<semaphore_mem>> -> memref<1x!tpu.dma_semaphore, #tpu.memory_space<semaphore_mem>>
    %49 = tpu.memref_squeeze %48 : memref<1x!tpu.dma_semaphore, #tpu.memory_space<semaphore_mem>> -> memref<!tpu.dma_semaphore, #tpu.memory_space<semaphore_mem>>
    tpu.enqueue_dma source(%46 : memref<1x32xf32, #tpu.memory_space<any>>) target(%47 : memref<1x32xf32, #tpu.memory_space<vmem>>) target_semaphore(%49 : memref<!tpu.dma_semaphore, #tpu.memory_space<semaphore_mem>>)
    %c7_i32 = arith.constant 7 : i32
    %50 = arith.addi %0, %c7_i32 : i32
    %51 = arith.index_cast %50 : i32 to index
    %52 = memref.load %arg1[%51] : memref<16xi32, #tpu.memory_space<smem>>
    %c0_i32_28 = arith.constant 0 : i32
    %c0_i32_29 = arith.constant 0 : i32
    %53 = tpu.memref_slice %arg5[%52, %c0_i32_29] : memref<32x32xf32, #tpu.memory_space<any>> -> memref<1x32xf32, #tpu.memory_space<any>>
    %c7_i32_30 = arith.constant 7 : i32
    %c0_i32_31 = arith.constant 0 : i32
    %54 = tpu.memref_slice %arg12[%c7_i32_30, %c0_i32_31] : memref<8x32xf32, #tpu.memory_space<vmem>> -> memref<1x32xf32, #tpu.memory_space<vmem>>
    %55 = tpu.memref_slice %arg13[%c0_i32_28] : memref<1x!tpu.dma_semaphore, #tpu.memory_space<semaphore_mem>> -> memref<1x!tpu.dma_semaphore, #tpu.memory_space<semaphore_mem>>
    %56 = tpu.memref_squeeze %55 : memref<1x!tpu.dma_semaphore, #tpu.memory_space<semaphore_mem>> -> memref<!tpu.dma_semaphore, #tpu.memory_space<semaphore_mem>>
    tpu.enqueue_dma source(%53 : memref<1x32xf32, #tpu.memory_space<any>>) target(%54 : memref<1x32xf32, #tpu.memory_space<vmem>>) target_semaphore(%56 : memref<!tpu.dma_semaphore, #tpu.memory_space<semaphore_mem>>)
    %c0 = arith.constant 0 : index
    %c0_32 = arith.constant 0 : index
    %57 = vector.load %arg2[%c0, %c0_32] : memref<8x1xi32, #tpu.memory_space<vmem>>, vector<8x1xi32>
    %58 = tpu.iota {dimensions = array<i32: 1>} : vector<8x16xi32>
    %59 = vector.broadcast %57 : vector<8x1xi32> to vector<8x16xi32>
    %60 = arith.cmpi eq, %59, %58 : vector<8x16xi32>
    %61 = arith.extui %60 : vector<8x16xi1> to vector<8x16xi32>
    %62 = arith.sitofp %61 : vector<8x16xi32> to vector<8x16xf32>
    %c0_33 = arith.constant 0 : index
    %c0_34 = arith.constant 0 : index
    %63 = vector.load %arg6[%c0_33, %c0_34] : memref<16x32xf32, #tpu.memory_space<vmem>>, vector<16x32xf32>
    %cst = arith.constant dense<0.000000e+00> : vector<8x32xf32>
    %64 = tpu.matmul %62, %63, %cst {dimension_numbers = #tpu.dot_dimension_numbers<[1], [0], [0], [1], [0, 0, 1, 1], [], []>} : vector<8x16xf32>, vector<16x32xf32>, vector<8x32xf32> -> vector<8x32xf32>
    %c0_35 = arith.constant 0 : index
    %c0_36 = arith.constant 0 : index
    %65 = vector.load %arg3[%c0_35, %c0_36] : memref<8x1xi32, #tpu.memory_space<vmem>>, vector<8x1xi32>
    %c0_37 = arith.constant 0 : index
    %c0_38 = arith.constant 0 : index
    %66 = vector.load %arg7[%c0_37, %c0_38] : memref<2x32xf32, #tpu.memory_space<vmem>>, vector<1x32xf32>
    %c0_i32_39 = arith.constant 0 : i32
    %67 = vector.broadcast %c0_i32_39 : i32 to vector<8x1xi32>
    %68 = arith.cmpi eq, %65, %67 : vector<8x1xi32>
    %cst_40 = arith.constant 1.000000e+00 : f32
    %cst_41 = arith.constant 0.000000e+00 : f32
    %69 = vector.broadcast %cst_40 : f32 to vector<8x1xf32>
    %70 = vector.broadcast %cst_41 : f32 to vector<8x1xf32>
    %71 = arith.select %68, %69, %70 : vector<8x1xi1>, vector<8x1xf32>
    %72 = vector.broadcast %71 : vector<8x1xf32> to vector<8x32xf32>
    %73 = vector.broadcast %66 : vector<1x32xf32> to vector<8x32xf32>
    %74 = arith.mulf %72, %73 : vector<8x32xf32>
    %75 = arith.addf %64, %74 : vector<8x32xf32>
    %c1 = arith.constant 1 : index
    %c0_42 = arith.constant 0 : index
    %76 = vector.load %arg7[%c1, %c0_42] : memref<2x32xf32, #tpu.memory_space<vmem>>, vector<1x32xf32>
    %c1_i32_43 = arith.constant 1 : i32
    %77 = vector.broadcast %c1_i32_43 : i32 to vector<8x1xi32>
    %78 = arith.cmpi eq, %65, %77 : vector<8x1xi32>
    %cst_44 = arith.constant 1.000000e+00 : f32
    %cst_45 = arith.constant 0.000000e+00 : f32
    %79 = vector.broadcast %cst_44 : f32 to vector<8x1xf32>
    %80 = vector.broadcast %cst_45 : f32 to vector<8x1xf32>
    %81 = arith.select %78, %79, %80 : vector<8x1xi1>, vector<8x1xf32>
    %82 = vector.broadcast %81 : vector<8x1xf32> to vector<8x32xf32>
    %83 = vector.broadcast %76 : vector<1x32xf32> to vector<8x32xf32>
    %84 = arith.mulf %82, %83 : vector<8x32xf32>
    %85 = arith.addf %75, %84 : vector<8x32xf32>
    %c0_46 = arith.constant 0 : index
    %c0_47 = arith.constant 0 : index
    %86 = vector.load %arg4[%c0_46, %c0_47] : memref<8x1xi32, #tpu.memory_space<vmem>>, vector<8x1xi32>
    %c0_48 = arith.constant 0 : index
    %c0_49 = arith.constant 0 : index
    %87 = vector.load %arg8[%c0_48, %c0_49] : memref<4x32xf32, #tpu.memory_space<vmem>>, vector<1x32xf32>
    %c0_i32_50 = arith.constant 0 : i32
    %88 = vector.broadcast %c0_i32_50 : i32 to vector<8x1xi32>
    %89 = arith.cmpi eq, %86, %88 : vector<8x1xi32>
    %cst_51 = arith.constant 1.000000e+00 : f32
    %cst_52 = arith.constant 0.000000e+00 : f32
    %90 = vector.broadcast %cst_51 : f32 to vector<8x1xf32>
    %91 = vector.broadcast %cst_52 : f32 to vector<8x1xf32>
    %92 = arith.select %89, %90, %91 : vector<8x1xi1>, vector<8x1xf32>
    %93 = vector.broadcast %92 : vector<8x1xf32> to vector<8x32xf32>
    %94 = vector.broadcast %87 : vector<1x32xf32> to vector<8x32xf32>
    %95 = arith.mulf %93, %94 : vector<8x32xf32>
    %96 = arith.addf %85, %95 : vector<8x32xf32>
    %c1_53 = arith.constant 1 : index
    %c0_54 = arith.constant 0 : index
    %97 = vector.load %arg8[%c1_53, %c0_54] : memref<4x32xf32, #tpu.memory_space<vmem>>, vector<1x32xf32>
    %c1_i32_55 = arith.constant 1 : i32
    %98 = vector.broadcast %c1_i32_55 : i32 to vector<8x1xi32>
    %99 = arith.cmpi eq, %86, %98 : vector<8x1xi32>
    %cst_56 = arith.constant 1.000000e+00 : f32
    %cst_57 = arith.constant 0.000000e+00 : f32
    %100 = vector.broadcast %cst_56 : f32 to vector<8x1xf32>
    %101 = vector.broadcast %cst_57 : f32 to vector<8x1xf32>
    %102 = arith.select %99, %100, %101 : vector<8x1xi1>, vector<8x1xf32>
    %103 = vector.broadcast %102 : vector<8x1xf32> to vector<8x32xf32>
    %104 = vector.broadcast %97 : vector<1x32xf32> to vector<8x32xf32>
    %105 = arith.mulf %103, %104 : vector<8x32xf32>
    %106 = arith.addf %96, %105 : vector<8x32xf32>
    %c2 = arith.constant 2 : index
    %c0_58 = arith.constant 0 : index
    %107 = vector.load %arg8[%c2, %c0_58] : memref<4x32xf32, #tpu.memory_space<vmem>>, vector<1x32xf32>
    %c2_i32_59 = arith.constant 2 : i32
    %108 = vector.broadcast %c2_i32_59 : i32 to vector<8x1xi32>
    %109 = arith.cmpi eq, %86, %108 : vector<8x1xi32>
    %cst_60 = arith.constant 1.000000e+00 : f32
    %cst_61 = arith.constant 0.000000e+00 : f32
    %110 = vector.broadcast %cst_60 : f32 to vector<8x1xf32>
    %111 = vector.broadcast %cst_61 : f32 to vector<8x1xf32>
    %112 = arith.select %109, %110, %111 : vector<8x1xi1>, vector<8x1xf32>
    %113 = vector.broadcast %112 : vector<8x1xf32> to vector<8x32xf32>
    %114 = vector.broadcast %107 : vector<1x32xf32> to vector<8x32xf32>
    %115 = arith.mulf %113, %114 : vector<8x32xf32>
    %116 = arith.addf %106, %115 : vector<8x32xf32>
    %c3 = arith.constant 3 : index
    %c0_62 = arith.constant 0 : index
    %117 = vector.load %arg8[%c3, %c0_62] : memref<4x32xf32, #tpu.memory_space<vmem>>, vector<1x32xf32>
    %c3_i32_63 = arith.constant 3 : i32
    %118 = vector.broadcast %c3_i32_63 : i32 to vector<8x1xi32>
    %119 = arith.cmpi eq, %86, %118 : vector<8x1xi32>
    %cst_64 = arith.constant 1.000000e+00 : f32
    %cst_65 = arith.constant 0.000000e+00 : f32
    %120 = vector.broadcast %cst_64 : f32 to vector<8x1xf32>
    %121 = vector.broadcast %cst_65 : f32 to vector<8x1xf32>
    %122 = arith.select %119, %120, %121 : vector<8x1xi1>, vector<8x1xf32>
    %123 = vector.broadcast %122 : vector<8x1xf32> to vector<8x32xf32>
    %124 = vector.broadcast %117 : vector<1x32xf32> to vector<8x32xf32>
    %125 = arith.mulf %123, %124 : vector<8x32xf32>
    %126 = arith.addf %116, %125 : vector<8x32xf32>
    %c0_i32_66 = arith.constant 0 : i32
    %c0_i32_67 = arith.constant 0 : i32
    %127 = tpu.memref_slice %arg5[%3, %c0_i32_67] : memref<32x32xf32, #tpu.memory_space<any>> -> memref<1x32xf32, #tpu.memory_space<any>>
    %c0_i32_68 = arith.constant 0 : i32
    %c0_i32_69 = arith.constant 0 : i32
    %128 = tpu.memref_slice %arg12[%c0_i32_68, %c0_i32_69] : memref<8x32xf32, #tpu.memory_space<vmem>> -> memref<1x32xf32, #tpu.memory_space<vmem>>
    %129 = tpu.memref_slice %arg13[%c0_i32_66] : memref<1x!tpu.dma_semaphore, #tpu.memory_space<semaphore_mem>> -> memref<1x!tpu.dma_semaphore, #tpu.memory_space<semaphore_mem>>
    %130 = tpu.memref_squeeze %129 : memref<1x!tpu.dma_semaphore, #tpu.memory_space<semaphore_mem>> -> memref<!tpu.dma_semaphore, #tpu.memory_space<semaphore_mem>>
    tpu.wait_dma2 semaphore(%130 : memref<!tpu.dma_semaphore, #tpu.memory_space<semaphore_mem>>) src(%127 : memref<1x32xf32, #tpu.memory_space<any>>) dst(%128 : memref<1x32xf32, #tpu.memory_space<vmem>>)
    %c0_i32_70 = arith.constant 0 : i32
    %c0_i32_71 = arith.constant 0 : i32
    %131 = tpu.memref_slice %arg5[%10, %c0_i32_71] : memref<32x32xf32, #tpu.memory_space<any>> -> memref<1x32xf32, #tpu.memory_space<any>>
    %c1_i32_72 = arith.constant 1 : i32
    %c0_i32_73 = arith.constant 0 : i32
    %132 = tpu.memref_slice %arg12[%c1_i32_72, %c0_i32_73] : memref<8x32xf32, #tpu.memory_space<vmem>> -> memref<1x32xf32, #tpu.memory_space<vmem>>
    %133 = tpu.memref_slice %arg13[%c0_i32_70] : memref<1x!tpu.dma_semaphore, #tpu.memory_space<semaphore_mem>> -> memref<1x!tpu.dma_semaphore, #tpu.memory_space<semaphore_mem>>
    %134 = tpu.memref_squeeze %133 : memref<1x!tpu.dma_semaphore, #tpu.memory_space<semaphore_mem>> -> memref<!tpu.dma_semaphore, #tpu.memory_space<semaphore_mem>>
    tpu.wait_dma2 semaphore(%134 : memref<!tpu.dma_semaphore, #tpu.memory_space<semaphore_mem>>) src(%131 : memref<1x32xf32, #tpu.memory_space<any>>) dst(%132 : memref<1x32xf32, #tpu.memory_space<vmem>>)
    %c0_i32_74 = arith.constant 0 : i32
    %c0_i32_75 = arith.constant 0 : i32
    %135 = tpu.memref_slice %arg5[%17, %c0_i32_75] : memref<32x32xf32, #tpu.memory_space<any>> -> memref<1x32xf32, #tpu.memory_space<any>>
    %c2_i32_76 = arith.constant 2 : i32
    %c0_i32_77 = arith.constant 0 : i32
    %136 = tpu.memref_slice %arg12[%c2_i32_76, %c0_i32_77] : memref<8x32xf32, #tpu.memory_space<vmem>> -> memref<1x32xf32, #tpu.memory_space<vmem>>
    %137 = tpu.memref_slice %arg13[%c0_i32_74] : memref<1x!tpu.dma_semaphore, #tpu.memory_space<semaphore_mem>> -> memref<1x!tpu.dma_semaphore, #tpu.memory_space<semaphore_mem>>
    %138 = tpu.memref_squeeze %137 : memref<1x!tpu.dma_semaphore, #tpu.memory_space<semaphore_mem>> -> memref<!tpu.dma_semaphore, #tpu.memory_space<semaphore_mem>>
    tpu.wait_dma2 semaphore(%138 : memref<!tpu.dma_semaphore, #tpu.memory_space<semaphore_mem>>) src(%135 : memref<1x32xf32, #tpu.memory_space<any>>) dst(%136 : memref<1x32xf32, #tpu.memory_space<vmem>>)
    %c0_i32_78 = arith.constant 0 : i32
    %c0_i32_79 = arith.constant 0 : i32
    %139 = tpu.memref_slice %arg5[%24, %c0_i32_79] : memref<32x32xf32, #tpu.memory_space<any>> -> memref<1x32xf32, #tpu.memory_space<any>>
    %c3_i32_80 = arith.constant 3 : i32
    %c0_i32_81 = arith.constant 0 : i32
    %140 = tpu.memref_slice %arg12[%c3_i32_80, %c0_i32_81] : memref<8x32xf32, #tpu.memory_space<vmem>> -> memref<1x32xf32, #tpu.memory_space<vmem>>
    %141 = tpu.memref_slice %arg13[%c0_i32_78] : memref<1x!tpu.dma_semaphore, #tpu.memory_space<semaphore_mem>> -> memref<1x!tpu.dma_semaphore, #tpu.memory_space<semaphore_mem>>
    %142 = tpu.memref_squeeze %141 : memref<1x!tpu.dma_semaphore, #tpu.memory_space<semaphore_mem>> -> memref<!tpu.dma_semaphore, #tpu.memory_space<semaphore_mem>>
    tpu.wait_dma2 semaphore(%142 : memref<!tpu.dma_semaphore, #tpu.memory_space<semaphore_mem>>) src(%139 : memref<1x32xf32, #tpu.memory_space<any>>) dst(%140 : memref<1x32xf32, #tpu.memory_space<vmem>>)
    %c0_i32_82 = arith.constant 0 : i32
    %c0_i32_83 = arith.constant 0 : i32
    %143 = tpu.memref_slice %arg5[%31, %c0_i32_83] : memref<32x32xf32, #tpu.memory_space<any>> -> memref<1x32xf32, #tpu.memory_space<any>>
    %c4_i32_84 = arith.constant 4 : i32
    %c0_i32_85 = arith.constant 0 : i32
    %144 = tpu.memref_slice %arg12[%c4_i32_84, %c0_i32_85] : memref<8x32xf32, #tpu.memory_space<vmem>> -> memref<1x32xf32, #tpu.memory_space<vmem>>
    %145 = tpu.memref_slice %arg13[%c0_i32_82] : memref<1x!tpu.dma_semaphore, #tpu.memory_space<semaphore_mem>> -> memref<1x!tpu.dma_semaphore, #tpu.memory_space<semaphore_mem>>
    %146 = tpu.memref_squeeze %145 : memref<1x!tpu.dma_semaphore, #tpu.memory_space<semaphore_mem>> -> memref<!tpu.dma_semaphore, #tpu.memory_space<semaphore_mem>>
    tpu.wait_dma2 semaphore(%146 : memref<!tpu.dma_semaphore, #tpu.memory_space<semaphore_mem>>) src(%143 : memref<1x32xf32, #tpu.memory_space<any>>) dst(%144 : memref<1x32xf32, #tpu.memory_space<vmem>>)
    %c0_i32_86 = arith.constant 0 : i32
    %c0_i32_87 = arith.constant 0 : i32
    %147 = tpu.memref_slice %arg5[%38, %c0_i32_87] : memref<32x32xf32, #tpu.memory_space<any>> -> memref<1x32xf32, #tpu.memory_space<any>>
    %c5_i32_88 = arith.constant 5 : i32
    %c0_i32_89 = arith.constant 0 : i32
    %148 = tpu.memref_slice %arg12[%c5_i32_88, %c0_i32_89] : memref<8x32xf32, #tpu.memory_space<vmem>> -> memref<1x32xf32, #tpu.memory_space<vmem>>
    %149 = tpu.memref_slice %arg13[%c0_i32_86] : memref<1x!tpu.dma_semaphore, #tpu.memory_space<semaphore_mem>> -> memref<1x!tpu.dma_semaphore, #tpu.memory_space<semaphore_mem>>
    %150 = tpu.memref_squeeze %149 : memref<1x!tpu.dma_semaphore, #tpu.memory_space<semaphore_mem>> -> memref<!tpu.dma_semaphore, #tpu.memory_space<semaphore_mem>>
    tpu.wait_dma2 semaphore(%150 : memref<!tpu.dma_semaphore, #tpu.memory_space<semaphore_mem>>) src(%147 : memref<1x32xf32, #tpu.memory_space<any>>) dst(%148 : memref<1x32xf32, #tpu.memory_space<vmem>>)
    %c0_i32_90 = arith.constant 0 : i32
    %c0_i32_91 = arith.constant 0 : i32
    %151 = tpu.memref_slice %arg5[%45, %c0_i32_91] : memref<32x32xf32, #tpu.memory_space<any>> -> memref<1x32xf32, #tpu.memory_space<any>>
    %c6_i32_92 = arith.constant 6 : i32
    %c0_i32_93 = arith.constant 0 : i32
    %152 = tpu.memref_slice %arg12[%c6_i32_92, %c0_i32_93] : memref<8x32xf32, #tpu.memory_space<vmem>> -> memref<1x32xf32, #tpu.memory_space<vmem>>
    %153 = tpu.memref_slice %arg13[%c0_i32_90] : memref<1x!tpu.dma_semaphore, #tpu.memory_space<semaphore_mem>> -> memref<1x!tpu.dma_semaphore, #tpu.memory_space<semaphore_mem>>
    %154 = tpu.memref_squeeze %153 : memref<1x!tpu.dma_semaphore, #tpu.memory_space<semaphore_mem>> -> memref<!tpu.dma_semaphore, #tpu.memory_space<semaphore_mem>>
    tpu.wait_dma2 semaphore(%154 : memref<!tpu.dma_semaphore, #tpu.memory_space<semaphore_mem>>) src(%151 : memref<1x32xf32, #tpu.memory_space<any>>) dst(%152 : memref<1x32xf32, #tpu.memory_space<vmem>>)
    %c0_i32_94 = arith.constant 0 : i32
    %c0_i32_95 = arith.constant 0 : i32
    %155 = tpu.memref_slice %arg5[%52, %c0_i32_95] : memref<32x32xf32, #tpu.memory_space<any>> -> memref<1x32xf32, #tpu.memory_space<any>>
    %c7_i32_96 = arith.constant 7 : i32
    %c0_i32_97 = arith.constant 0 : i32
    %156 = tpu.memref_slice %arg12[%c7_i32_96, %c0_i32_97] : memref<8x32xf32, #tpu.memory_space<vmem>> -> memref<1x32xf32, #tpu.memory_space<vmem>>
    %157 = tpu.memref_slice %arg13[%c0_i32_94] : memref<1x!tpu.dma_semaphore, #tpu.memory_space<semaphore_mem>> -> memref<1x!tpu.dma_semaphore, #tpu.memory_space<semaphore_mem>>
    %158 = tpu.memref_squeeze %157 : memref<1x!tpu.dma_semaphore, #tpu.memory_space<semaphore_mem>> -> memref<!tpu.dma_semaphore, #tpu.memory_space<semaphore_mem>>
    tpu.wait_dma2 semaphore(%158 : memref<!tpu.dma_semaphore, #tpu.memory_space<semaphore_mem>>) src(%155 : memref<1x32xf32, #tpu.memory_space<any>>) dst(%156 : memref<1x32xf32, #tpu.memory_space<vmem>>)
    %c0_98 = arith.constant 0 : index
    %c0_99 = arith.constant 0 : index
    %159 = vector.load %arg12[%c0_98, %c0_99] : memref<8x32xf32, #tpu.memory_space<vmem>>, vector<8x32xf32>
    %160 = arith.addf %126, %159 : vector<8x32xf32>
    %cst_100 = arith.constant dense<0.000000e+00> : vector<8xf32>
    %161 = vector.multi_reduction <add>, %160, %cst_100 [1] : vector<8x32xf32> to vector<8xf32>
    %162 = vector.shape_cast %161 : vector<8xf32> to vector<8x1xf32>
    %cst_101 = arith.constant 3.200000e+01 : f32
    %163 = vector.broadcast %cst_101 : f32 to vector<8x1xf32>
    %164 = arith.divf %162, %163 : vector<8x1xf32>
    %165 = vector.broadcast %164 : vector<8x1xf32> to vector<8x32xf32>
    %166 = arith.subf %160, %165 : vector<8x32xf32>
    %167 = vector.broadcast %164 : vector<8x1xf32> to vector<8x32xf32>
    %168 = arith.subf %160, %167 : vector<8x32xf32>
    %169 = arith.mulf %166, %168 : vector<8x32xf32>
    %cst_102 = arith.constant dense<0.000000e+00> : vector<8xf32>
    %170 = vector.multi_reduction <add>, %169, %cst_102 [1] : vector<8x32xf32> to vector<8xf32>
    %171 = vector.shape_cast %170 : vector<8xf32> to vector<8x1xf32>
    %cst_103 = arith.constant 3.200000e+01 : f32
    %172 = vector.broadcast %cst_103 : f32 to vector<8x1xf32>
    %173 = arith.divf %171, %172 : vector<8x1xf32>
    %174 = vector.broadcast %164 : vector<8x1xf32> to vector<8x32xf32>
    %175 = arith.subf %160, %174 : vector<8x32xf32>
    %cst_104 = arith.constant 9.99999996E-13 : f32
    %176 = vector.broadcast %cst_104 : f32 to vector<8x1xf32>
    %177 = arith.addf %173, %176 : vector<8x1xf32>
    %178 = math.rsqrt %177 : vector<8x1xf32>
    %179 = vector.broadcast %178 : vector<8x1xf32> to vector<8x32xf32>
    %180 = arith.mulf %175, %179 : vector<8x32xf32>
    %c0_105 = arith.constant 0 : index
    %c0_106 = arith.constant 0 : index
    %181 = vector.load %arg9[%c0_105, %c0_106] : memref<1x32xf32, #tpu.memory_space<vmem>>, vector<1x32xf32>
    %182 = vector.broadcast %181 : vector<1x32xf32> to vector<8x32xf32>
    %183 = arith.mulf %180, %182 : vector<8x32xf32>
    %c0_107 = arith.constant 0 : index
    %c0_108 = arith.constant 0 : index
    %184 = vector.load %arg10[%c0_107, %c0_108] : memref<1x32xf32, #tpu.memory_space<vmem>>, vector<1x32xf32>
    %185 = vector.broadcast %184 : vector<1x32xf32> to vector<8x32xf32>
    %186 = arith.addf %183, %185 : vector<8x32xf32>
    %c0_109 = arith.constant 0 : index
    %c0_110 = arith.constant 0 : index
    %187 = vector.load %arg11[%c0_109, %c0_110] : memref<8x32xf32, #tpu.memory_space<vmem>>, vector<8x32xf32>
    tpu.vector_store %arg11[%c0_109, %c0_110], %186 {strides = array<i32>} : memref<8x32xf32, #tpu.memory_space<vmem>>, vector<8x32xf32>,
    return
  }
  func.func @transform_0(%arg0: i32, %arg1: memref<16xi32, #tpu.memory_space<smem>>) -> (i32, i32) {
    %c0_i32 = arith.constant 0 : i32
    %c0_i32_0 = arith.constant 0 : i32
    return %arg0, %c0_i32 : i32, i32
  }
  func.func @transform_1(%arg0: i32, %arg1: memref<16xi32, #tpu.memory_space<smem>>) -> (i32, i32) {
    %c0_i32 = arith.constant 0 : i32
    %c0_i32_0 = arith.constant 0 : i32
    return %arg0, %c0_i32 : i32, i32
  }
  func.func @transform_2(%arg0: i32, %arg1: memref<16xi32, #tpu.memory_space<smem>>) -> (i32, i32) {
    %c0_i32 = arith.constant 0 : i32
    %c0_i32_0 = arith.constant 0 : i32
    return %arg0, %c0_i32 : i32, i32
  }
  func.func @transform_4(%arg0: i32, %arg1: memref<16xi32, #tpu.memory_space<smem>>) -> (i32, i32) {
    %c0_i32 = arith.constant 0 : i32
    %c0_i32_0 = arith.constant 0 : i32
    %c0_i32_1 = arith.constant 0 : i32
    return %c0_i32, %c0_i32_0 : i32, i32
  }
  func.func @transform_5(%arg0: i32, %arg1: memref<16xi32, #tpu.memory_space<smem>>) -> (i32, i32) {
    %c0_i32 = arith.constant 0 : i32
    %c0_i32_0 = arith.constant 0 : i32
    %c0_i32_1 = arith.constant 0 : i32
    return %c0_i32, %c0_i32_0 : i32, i32
  }
  func.func @transform_6(%arg0: i32, %arg1: memref<16xi32, #tpu.memory_space<smem>>) -> (i32, i32) {
    %c0_i32 = arith.constant 0 : i32
    %c0_i32_0 = arith.constant 0 : i32
    %c0_i32_1 = arith.constant 0 : i32
    return %c0_i32, %c0_i32_0 : i32, i32
  }
  func.func @transform_7(%arg0: i32, %arg1: memref<16xi32, #tpu.memory_space<smem>>) -> (i32, i32) {
    %c0_i32 = arith.constant 0 : i32
    %c0_i32_0 = arith.constant 0 : i32
    %c0_i32_1 = arith.constant 0 : i32
    return %c0_i32, %c0_i32_0 : i32, i32
  }
  func.func @transform_8(%arg0: i32, %arg1: memref<16xi32, #tpu.memory_space<smem>>) -> (i32, i32) {
    %c0_i32 = arith.constant 0 : i32
    %c0_i32_0 = arith.constant 0 : i32
    %c0_i32_1 = arith.constant 0 : i32
    return %c0_i32, %c0_i32_0 : i32, i32
  }
  func.func @transform_9(%arg0: i32, %arg1: memref<16xi32, #tpu.memory_space<smem>>) -> (i32, i32) {
    %c0_i32 = arith.constant 0 : i32
    %c0_i32_0 = arith.constant 0 : i32
    return %arg0, %c0_i32 : i32, i32
  }
}

</mosaic_0001>

<bundles_post_ra>
// kernel: tpu_custom_call.1
= control target key start
LH: loop header
LB: loop body
LE: loop exit
PB: predicated region body
PF: predicated region fallthrough
CT: control target
= control target key end

     0   :  { %s1579_s0 = inlined_call_operand.vmem [shape: s32[16], index: 0, kind: input, shape index: {}]   ;;  %s1580_s1 = inlined_call_operand.vmem [shape: s32[16,1], index: 1, kind: input, shape index: {}]   ;;  %s1581_s2 = inlined_call_operand.vmem [shape: s32[16,1], index: 2, kind: input, shape index: {}]   ;;  %s1582_s3 = inlined_call_operand.vmem [shape: s32[16,1], index: 3, kind: input, shape index: {}]   ;;  %s1583_s4 = inlined_call_operand.vmem [shape: f32[32,32], index: 4, kind: input, shape index: {}]   ;;  %s1584_s5 = inlined_call_operand.vmem [shape: f32[16,32], index: 5, kind: input, shape index: {}]   ;;  %s1585_s6 = inlined_call_operand.vmem [shape: f32[2,32], index: 6, kind: input, shape index: {}]   ;;  %s1586_s7 = inlined_call_operand.vmem [shape: f32[4,32], index: 7, kind: input, shape index: {}]   ;;  %s1587_s8 = inlined_call_operand.vmem [shape: f32[1,32], index: 8, kind: input, shape index: {}]   ;;  %s1588_s9 = inlined_call_operand.vmem [shape: f32[1,32], index: 9, kind: input, shape index: {}]   ;;  %s1589_s10 = inlined_call_operand.hbm [shape: f32[16,32], index: 10, kind: output, shape index: {}]  }
   0x1   :  { %s15_s15 = sshll.u32 %s1579_s0, 4  ;;  %s16_s15 = int_to_ptr.vmem [resolvable:$true] %s15_s15 }
   0x2   :  { %s1230_s16 = scalar_lea.vmem %s16_s15, 16  ;;  %p1235_p1 = scmp.lt.s32.totalorder %s16_s15, %s16_s15 }
   0x3   :  { %p1231_p0 = scmp.ne.s32.totalorder %s16_s15, %s1230_s16  ;;  %p1236_p2 = scmp.lt.s32.totalorder %s1230_s16, %s1230_s16 }
   0x5   :  { %p1237_p3 = por %p1236_p2, %p1235_p1 }
   0x7   :  { %p1238_p4 = pnand %p1237_p3, %p1231_p0 }
   0x9   :  { %1241 = shalt.err (!%p1238_p4)  }
   0xa   :  { %s1310_s17 = smov [#allocation5]  }
   0xb   :  { %18 = dma.vmem_to_smem %s16_s15, 16, %s1310_s17, [#allocation4] }
   0xc   :  { %1286 = dma.done.wait [#allocation4], 16 }
   0xd   :  { %1287 = vsyncadd [#allocation4], 4294967280 }
   0xe   :  { %20 = sfence }
   0xf   :  { %21 = vsyncpa [#allocation7], 0 }
  0x10   :  { %23 = vsyncpa [#allocation7 + $0x1], 0  ;;  %s1374_s18 = smov 0   ;;  %s1376_s19 = smov 0  }
  0x11   :  { %s1378_s0 = smov 0   ;;  %s1380_s20 = smov 0  }
  0x12 LB: > { %1597 = sst [smem:[#allocation19_spill]] %s1296_s18  ;;  %s1395_s21 = sadd.s32 4294967295, %s1308_s20   ;;  %s1308_s20 = sphi %s1380_s20, %s1612_s20   ;;  %s1304_s0 = sphi %s1378_s0, %s1614_s0   ;;  %s1300_s19 = sphi %s1376_s19, %s1616_s19   ;;  %s1296_s18 = sphi %s1374_s18, %s1615_s18  }
  0x13   : > { %1598 = sst [smem:[#allocation20_spill]] %s1304_s0  ;;  %s1145_s22 = sadd.s32 4294967294, %s1308_s20  }
  0x14   : > { %1599 = sst [smem:[#allocation21_spill]] %s1308_s20  ;;  %s1399_s23 = sadd.s32 1, %s1308_s20  }
  0x15   : > { %1600 = sst [smem:[#allocation22_spill]] %s1399_s23  ;;  %s219_s24 = sadd.s32 1, %s1304_s0 }
  0x16   : > { %s216_s25 = ssub.s32 %s1308_s20, %s1399_s23  ;;  %p229_p5 = scmp.ne.s32.totalorder %s1304_s0, %s1300_s19 }
  0x17   : > { %p217_p6 = scmp.eq.s32.totalorder %s216_s25, 0  ;;  %p230_p7 = scmp.eq.s32.totalorder %s1395_s21, 1 }
  0x18   : > { %p235_p8 = scmp.ne.s32.totalorder %s1300_s19, %s1296_s18  ;;  %p236_p9 = scmp.eq.s32.totalorder %s1145_s22, 1 }
  0x19   : > { %s1410_s26 = scalar_select %p217_p6, %s1304_s0, %s219_s24  }
  0x1a   : > { %p1412_p10 = por %p230_p7, %p229_p5  ;;  %p1416_p11 = por %p236_p9, %p235_p8 }
  0x1b   : > { %1601 = sst [smem:[#allocation23_spill]] %s1410_s26  ;;  %p1148_p12 = scmp.ge.s32.totalorder %s1308_s20, 1 }
  0x1c   : > { %s1603_s28 = scalar_select %p1416_p11, 1, 0 }
  0x1d   : > { %p290_p13 = scmp.lt.s32.totalorder %s1308_s20, 3 }
  0x1e   : > { %1604 = sst [smem:[#allocation24_spill]] %s1603_s28 }
  0x1f   : > { %p291_p0 = pnand %p1148_p12, %p290_p13 }
  0x20   : > { %s1590_s29 = sand.u32 (!%p291_p0), 1, %s1300_s19   ;;  %p331_p1 = scmp.lt.s32.totalorder (!%p291_p0), %s1395_s21, 1 }
  0x21   : > { %294 = sbr.rel (%p291_p0) target bundleno = 799 (0x31f), region = 52  ;;  %s1426_s30 = sshll.u32 (!%p291_p0), %s1590_s29, 3 }
  0x22   : > { %s1429_s11 = sshll.u32 (!%p291_p0), %s1395_s21, 3 }
  0x23   : > { %s344_s12 = sld [smem:[#allocation5 + %s1429_s11]] (!%p291_p0) }
  0x28   : > { %s332_s13 = scalar_select %p331_p1, %s1395_s21, 1 }
  0x2a   : > { %s1433_s14 = sshll.u32 %s332_s13, 3  ;;  %s345_s13 = scalar_lea.vmem %s1583_s4, %s344_s12 }
  0x2b   : > { %s338_s25 = scalar_lea.vmem %s1581_s2, %s1433_s14  ;;  %s342_s0 = scalar_lea.vmem %s1582_s3, %s1433_s14  ;;  %v363_v0 = vld [vmem:[%s345_s13] sm:$0x1] }
  0x2c   : > { %364 = vst [vmem:[#allocation2] sm:$0x1] %v363_v0 }
  0x2d   : > { %389 = vsyncadd [#allocation3], 16  ;;  %s390_s15 = sadd.s32 1, %s1429_s11 }
  0x2e   : > { %s391_s16 = sld [smem:[#allocation5 + %s390_s15]] }
  0x34   : > { %s392_s22 = scalar_lea.vmem %s1583_s4, %s391_s16 }
  0x35   : > { %v411_v1 = vld [vmem:[%s392_s22] sm:$0x1] }
  0x36   : > { %412 = vst [vmem:[#allocation2 + $0x1] sm:$0x1] %v411_v1 }
  0x37   : > { %437 = vsyncadd [#allocation3], 16  ;;  %s438_s26 = sadd.s32 2, %s1429_s11 }
  0x38   : > { %s439_s29 = sld [smem:[#allocation5 + %s438_s26]] }
  0x3e   : > { %s440_s28 = scalar_lea.vmem %s1583_s4, %s439_s29 }
  0x3f   : > { %v459_v2 = vld [vmem:[%s440_s28] sm:$0x1] }
  0x40   : > { %460 = vst [vmem:[#allocation2 + $0x2] sm:$0x1] %v459_v2 }
  0x41   : > { %485 = vsyncadd [#allocation3], 16  ;;  %s486_s12 = sadd.s32 3, %s1429_s11 }
  0x42   : > { %s487_s13 = sld [smem:[#allocation5 + %s486_s12]] }
  0x48   : > { %s488_s20 = scalar_lea.vmem %s1583_s4, %s487_s13 }
  0x49   : > { %v507_v3 = vld [vmem:[%s488_s20] sm:$0x1] }
  0x4a   : > { %508 = vst [vmem:[#allocation2 + $0x3] sm:$0x1] %v507_v3 }
  0x4b   : > { %533 = vsyncadd [#allocation3], 16  ;;  %s534_s17 = sadd.s32 4, %s1429_s11 }
  0x4c   : > { %s535_s16 = sld [smem:[#allocation5 + %s534_s17]] }
  0x52   : > { %s536_s29 = scalar_lea.vmem %s1583_s4, %s535_s16 }
  0x53   : > { %v555_v4 = vld [vmem:[%s536_s29] sm:$0x1] }
  0x54   : > { %556 = vst [vmem:[#allocation2 + $0x4] sm:$0x1] %v555_v4 }
  0x55   : > { %581 = vsyncadd [#allocation3], 16  ;;  %s582_s24 = sadd.s32 5, %s1429_s11 }
  0x56   : > { %s583_s23 = sld [smem:[#allocation5 + %s582_s24]] }
  0x5c   : > { %s584_s18 = scalar_lea.vmem %s1583_s4, %s583_s23 }
  0x5d   : > { %v603_v5 = vld [vmem:[%s584_s18] sm:$0x1] }
  0x5e   : > { %604 = vst [vmem:[#allocation2 + $0x5] sm:$0x1] %v603_v5 }
  0x5f   : > { %629 = vsyncadd [#allocation3], 16  ;;  %s630_s13 = sadd.s32 6, %s1429_s11 }
  0x60   : > { %s631_s15 = sld [smem:[#allocation5 + %s630_s13]] }
  0x66   : > { %s632_s16 = scalar_lea.vmem %s1583_s4, %s631_s15 }
  0x67   : > { %v651_v6 = vld [vmem:[%s632_s16] sm:$0x1] }
  0x68   : > { %652 = vst [vmem:[#allocation2 + $0x6] sm:$0x1] %v651_v6 }
  0x69   : > { %677 = vsyncadd [#allocation3], 16  ;;  %s678_s22 = sadd.s32 7, %s1429_s11  ;;  %s1605_s18 = scalar_lea.vmem %s1580_s1, %s1433_s14  ;;  %v737_v9 = vld [vmem:[%s338_s25] sm:$0xff]  ;;  %v1311_v10 = vmov 0  }
  0x6a   : > { %s679_s26 = sld [smem:[#allocation5 + %s678_s22]]  ;;  %v726_v8 = vld [vmem:[%s1605_s18] sm:$0xff]  ;;  %1226 = vset.pattern.permute.xlu0 %v1311_v10  ;;  %vm739_vm0 = vcmp.eq.s32.totalorder %v737_v9, 0 }
  0x6b   : > { %v839_v11 = vld [vmem:[%s342_s0] sm:$0xff] }
  0x70   : > { %s680_s23 = scalar_lea.vmem %s1583_s4, %s679_s26 }
  0x71   : > { %v699_v7 = vld [vmem:[%s680_s23] sm:$0x1] }
  0x72   : > { %700 = vst [vmem:[#allocation2 + $0x7] sm:$0x1] %v699_v7 }
  0x73   : > { %725 = vsyncadd [#allocation3], 16  ;;  %v1312_v12 = vmov 0.0|0.0   ;;  %v735_v13 = vld [vmem:[%s1584_s5] sm:$0xff]  ;;  %730 = vperm.xlu0 %1226, %v726_v8   ;;  %v736_v14 = vld [vmem:[%s1584_s5 + $0x8] sm:$0xff]  ;;  %1227 = vset.pattern.permute.xlu1 %v1311_v10  ;;  %v1313_v15 = vmov 0.0   ;;  %v727_v23 = vlaneseq }
  0x74   : > { %1179 = vmatprep.subr.bf16.mxu0 %v1312_v12  ;;  %v740_v16 = vsel %vm739_vm0, 1.0, %v1313_v15  ;;  %v1180_v17 = vpack.c.bf16 %v736_v14, %v735_v13  ;;  %vm855_vm1 = vcmp.eq.s32.totalorder %v839_v11, 1  ;;  %vm1314_vm2 = vmmov 0   ;;  %v1155_v29 = vld [vmem:[%s1585_s6] ss:$0 sm:$0xff] }
  0x75   : > { %1176 = vmatprep.mubr.msk.f32.mxu0 %vm1314_vm2, %v1313_v15  ;;  %v856_v18 = vsel %vm855_vm1, 1.0, %v1313_v15  ;;  %vm883_vm3 = vcmp.eq.s32.totalorder %v839_v11, 3  ;;  %vm826_vm4 = vcmp.eq.s32.totalorder %v737_v9, 1  ;;  %vm841_vm5 = vcmp.eq.s32.totalorder %v839_v11, 0  ;;  %v1157_v30 = vld [vmem:[%s1585_s6 + $0x1] ss:$0 sm:$0xff] }
  0x76   : > { %1181 = vmatpush3.bf16.msra.mxu0 %v1180_v17  ;;  %v884_v19 = vsel %vm883_vm3, 1.0, %v1313_v15  ;;  %v827_v20 = vsel %vm826_vm4, 1.0, %v1313_v15  ;;  %v842_v21 = vsel %vm841_vm5, 1.0, %v1313_v15  ;;  %vm869_vm6 = vcmp.eq.s32.totalorder %v839_v11, 2  ;;  %v1158_v34 = vld [vmem:[%s1586_s7] ss:$0 sm:$0xff] }
  0x77   : > { %743 = vperm.xlu0 %1226, %v740_v16   ;;  %830 = vperm.xlu1 %1227, %v827_v20   ;;  %v870_v22 = vsel %vm869_vm6, 1.0, %v1313_v15  ;;  %v728_v24 = vand.u32 127, %v727_v23  ;;  %vm751_vm7 = vcmask 130048   ;;  %v1159_v39 = vld [vmem:[%s1586_s7 + $0x1] ss:$0 sm:$0xff] }
  0x78   : > { %v1160_v42 = vld [vmem:[%s1586_s7 + $0x2] ss:$0 sm:$0xff]  ;;  %v1161_v46 = vld [vmem:[%s1586_s7 + $0x3] ss:$0 sm:$0xff] }
  0x7b   : > { %859 = vperm.xlu0 %1226, %v856_v18   ;;  %845 = vperm.xlu1 %1227, %v842_v21  }
  0x7f   : > { %887 = vperm.xlu0 %1226, %v884_v19   ;;  %873 = vperm.xlu1 %1227, %v870_v22  }
  0xf2   : > { %v731_v25 = vpop.permute.xlu0 %730 }
  0xf3   : > { %vm732_vm8 = vcmp.eq.s32.totalorder %v731_v25, %v728_v24 }
  0xf4   : > { %v1154_v26 = vsel %vm732_vm8, 1.0, %v1313_v15 }
  0xf5   : > { %1177 = vmatmul.mubr.msk.f32.vlgmr.msra.gmra.mrb[0].mxu0 %vm751_vm7, %v1154_v26 }
  0xf6   : > { %v831_v27 = vpop.permute.xlu1 %830  ;;  %v744_v28 = vpop.permute.xlu0 %743 }
  0xf7   : > { %v750_v32 = vmul.f32 %v1155_v29, %v744_v28  ;;  %v837_v36 = vmul.f32 %v1157_v30, %v831_v27 }
  0xfa   : > { %v846_v31 = vpop.permute.xlu1 %845  ;;  %v860_v33 = vpop.permute.xlu0 %859 }
  0xfb   : > { %v852_v40 = vmul.f32 %v1158_v34, %v846_v31  ;;  %v866_v44 = vmul.f32 %v1159_v39, %v860_v33 }
  0xfe   : > { %v874_v43 = vpop.permute.xlu1 %873  ;;  %v888_v47 = vpop.permute.xlu0 %887 }
  0xff   : > { %v880_v48 = vmul.f32 %v1160_v42, %v874_v43  ;;  %v894_v50 = vmul.f32 %v1161_v46, %v888_v47 }
 0x1c8   : > { %v821_v35 = vpop.f32.mrb[0].mxu0 }
 0x1c9   : > { %v822_v37 = vadd.f32 %v821_v35, %v750_v32  ;;  %v1178_v38 = vpop.f32.mrb[1].mxu0 }
 0x1cb   : > { %v838_v41 = vadd.f32 %v837_v36, %v822_v37 }
 0x1cd   : > { %v853_v45 = vadd.f32 %v852_v40, %v838_v41 }
 0x1cf   : > { %v867_v49 = vadd.f32 %v866_v44, %v853_v45 }
 0x1d1   : > { %v881_v51 = vadd.f32 %v880_v48, %v867_v49 }
 0x1d3   : > { %v895_v52 = vadd.f32 %v894_v50, %v881_v51 }
 0x1d4   : > { %1288 = dma.done.wait [#allocation3], 128 }
 0x1d5   : > { %1289 = vsyncadd [#allocation3], 4294967168  ;;  %v913_v53 = vld [vmem:[#allocation2] sm:$0xff]  ;;  %vm915_vm9 = vcmask 261120   ;;  %s1165_s26 = sshll.u32 %s1395_s21, 7  ;;  %s1606_s0 = scalar_lea.vmem [#allocation6], %s1426_s30 }
 0x1d6   : > { %v914_v54 = vadd.f32 %v913_v53, %v895_v52  ;;  %v1162_v1 = vld [vmem:[%s1587_s8] ss:$0 sm:$0xff]  ;;  %s961_s14 = sshll.u32 %s1606_s0, 4  ;;  %s1532_s24 = scalar_lea.hbm %s1589_s10, %s1165_s26  ;;  %s1534_s14 = int_to_ptr.vmem [resolvable:$true] %s961_s14 }
 0x1d7   : > { %v1163_v3 = vld [vmem:[%s1588_s9] ss:$0 sm:$0xff]  ;;  %s1607_s23 = smov %s1606_s0  ;;  %s1608_s28 = sand.u32 1, %s1300_s19  }
 0x1d8   : > { %v916_v55 = vsel %vm915_vm9, %v914_v54, 0.0  ;;  %s948_s12 = scalar_lea.sflag [#allocation7], %s1608_s28  ;;  %s1242_s21 = scalar_lea.vmem %s1534_s14, 128 }
 0x1d9   : > { %917 = vadd.xlane.f32.xlu0 %v916_v55  ;;  %p1243_p2 = scmp.ne.s32.totalorder %s1534_s14, %s1242_s21  ;;  %s1315_s18 = smov [#allocation6]  }
 0x1da   : > { %s1246_s13 = sshll.u32 %s1315_s18, 4  ;;  %s1247_s13 = int_to_ptr.vmem [resolvable:$false] %s1246_s13 }
 0x1db   : > { %p1244_p3 = pnand %p1243_p2, %p1412_p10  ;;  %s1248_s15 = scalar_lea.vmem %s1247_s13, 256 }
 0x1dc   : > { %p1249_p5 = scmp.lt.s32.totalorder %s1534_s14, %s1247_s13  ;;  %p1250_p6 = scmp.lt.s32.totalorder %s1248_s15, %s1242_s21 }
 0x1dd   : > { %p1245_p4 = pneg %p1244_p3 }
 0x1de   : > { %p1251_p7 = por %p1250_p6, %p1249_p5 }
 0x1e0   : > { %p1252_p8 = pnand %p1251_p7, %p1245_p4 }
 0x266   : > { %v918_v56 = vpop.xlane.xlu0 %917 }
 0x267   : > { %v920_v57 = vmul.f32 0.03125, %v918_v56 }
 0x269   : > { %v921_v58 = vsub.f32 %v914_v54, %v920_v57 }
 0x26b   : > { %v922_v59 = vmul.f32 %v921_v58, %v921_v58 }
 0x26d   : > { %v923_v60 = vsel %vm915_vm9, %v922_v59, 0.0 }
 0x26e   : > { %924 = vadd.xlane.f32.xlu0 %v923_v60 }
 0x2fb   : > { %v925_v61 = vpop.xlane.xlu0 %924 }
 0x2fc   : > { %v926_v62 = vmul.f32 0.03125, %v925_v61 }
 0x2fe   : > { %v927_v63 = vadd.f32 1e-12, %v926_v62 }
 0x300   : > { %1228 = vrsqrt.f32 %v927_v63 }
 0x30a   : > { %v1229_v0 = vpop.eup %1228 }
 0x30b   : > { %v929_v2 = vmul.f32 %v1229_v0, %v921_v58 }
 0x30d   : > { %v937_v4 = vmul.f32 %v1162_v1, %v929_v2 }
 0x30f   : > { %v945_v5 = vadd.f32 %v1163_v3, %v937_v4 }
 0x311   : > { %946 = vst.msk [vmem:[%s1607_s23] sm:$0xff] %vm915_vm9, %v945_v5 }
 0x312   : > { %1255 = shalt.err (!%p1252_p8)
}
 0x313   : > { %s1256_s30 = scalar_lea.hbm %s1532_s24, 128  ;;  %s1260_s17 = scalar_lea.hbm %s1589_s10, 256 }
 0x314   : > { %p1257_p9 = scmp.ne.s32.totalorder %s1532_s24, %s1256_s30  ;;  %p1261_p0 = scmp.lt.u32.totalorder %s1532_s24, %s1589_s10 }
 0x315   : > { %p1262_p1 = scmp.lt.u32.totalorder %s1260_s17, %s1256_s30  ;;  %p1264_p3 = scmp.lt.u32.totalorder %s1256_s30, %s1532_s24 }
 0x316   : > { %p1258_p12 = pnand %p1257_p9, %p1412_p10 }
 0x317   : > { %p1263_p2 = por %p1262_p1, %p1261_p0 }
 0x318   : > { %p1259_p13 = pneg %p1258_p12 }
 0x319   : > { %p1265_p4 = por %p1264_p3, %p1263_p2 }
 0x31b   : > { %p1266_p5 = pnand %p1265_p4, %p1259_p13 }
 0x31d   : > { %1269 = shalt.err (!%p1266_p5)
}
 0x31e   : > { %1182 = dma.vmem_to_hbm [thread:$0]  (%p1412_p10), %s1534_s14, 128, %s1532_s24, %s948_s12  }
 0x31f PF: > { %s1609_s26 = sld [smem:[#allocation21_spill]]  ;;  %s1610_s0 = sld [smem:[#allocation19_spill]] }
 0x325   : > { %p1188_p6 = scmp.ge.s32.totalorder %s1609_s26, 2  ;;  %s973_s29 = sand.u32 1, %s1610_s0  }
 0x326   : > { %s974_s23 = scalar_lea.sflag [#allocation7], %s973_s29 }
 0x327   : > { %p1185_p7 = pnand %p1188_p6, %p1416_p11 }
 0x329   : > { %1291 = dma.done.wait (!%p1185_p7), %s974_s23, 128  }
 0x32a   : > { %1293 = vsyncadd (!%p1185_p7), %s974_s23, 4294967168  ;;  %s1612_s20 = sld [smem:[#allocation22_spill]]  ;;  %s1613_s28 = sld [smem:[#allocation20_spill]] }
 0x32b   : > { %s1614_s0 = sld [smem:[#allocation23_spill]]  ;;  %s1615_s18 = smov %s1300_s19 }
 0x330   : > { %p26_p8 = scmp.ge.s32.totalorder %s1612_s20, 4   ;;  %s1616_s19 = smov %s1613_s28 }
 0x332   :  { %28 = sbr.rel (!%p26_p8) target bundleno = 18 (0x12), region = 428 }
 0x339   :  { %979 = vsyncpa [#allocation7], 1 }
 0x33a   :  { %981 = vsyncpa [#allocation7 + $0x1], 1 }
 0x33b   :  { %982 = vsyncmov [#allocation3] }
 0x33e   :  { %s983_s27 = vpop.sfrf %982 }
 0x33f   :  { %p1168_p10 = scmp.ne.s32.totalorder %s983_s27, 0 }
 0x341   :  { %987 = shalt.err (%p1168_p10)  }

</bundles_post_ra>
